<compile_context>
chip_gen: v5e
topology: v5e:2x2
jax: 0.10.0
libtpu: 0.0.40
codegen_flags: <defaults>
</compile_context>

<pallas_src>
import functools

import jax
import jax.numpy as jnp
from jax import lax
from jax.experimental import pallas as pl
from jax.experimental.pallas import tpu as pltpu


def _round_up(x, m):
    return (x + m - 1) // m * m


def _cdiv(a, b):
    return -(-a // b)


def _mlp_tail(h0, w1_ref, b1_ref, w2_ref, b2_ref, w3_ref, b3_ref, o_ref):
    """Layers after the (possibly split) input layer. h0: (TB, 512) f32, bias added."""
    h = jnp.maximum(h0, 0.0).astype(jnp.bfloat16)                       # (TB, 512) bf16
    h = jnp.dot(h, w1_ref[...], preferred_element_type=jnp.float32) + b1_ref[...]
    h = jnp.maximum(h, 0.0).astype(jnp.bfloat16)                        # (TB, 256) bf16
    h = jnp.dot(h, w2_ref[...], preferred_element_type=jnp.float32) + b2_ref[...]
    h = jnp.maximum(h, 0.0).astype(jnp.bfloat16)                        # (TB, 256) bf16
    # Final 256 -> 1 layer as a transposed-RHS matmul (q @ k.T pattern):
    # (1, 256) x (TB, 256)^T -> (1, TB).  The output row is lane-dense
    # (batch along lanes), so the store/writeback is contiguous instead of
    # TB masked single-lane stores.
    o = lax.dot_general(w3_ref[...], h, (((1,), (1,)), ((), ())),
                        preferred_element_type=jnp.float32)             # (1, TB)
    o = o + b3_ref[...]                                                 # b3: (1, 1)
    o_ref[...] = jnp.tanh(o).astype(o_ref.dtype)


def fc_kernel_extra(x_ref, xe_ref,
                    w0a_ref, w0b_ref, b0_ref,
                    w1_ref, b1_ref,
                    w2_ref, b2_ref,
                    w3_ref, b3_ref,
                    o_ref):
    # Split input layer: fuses the torch.cat into two matmuls.
    h0 = (jnp.dot(x_ref[...].astype(jnp.bfloat16), w0a_ref[...],
                  preferred_element_type=jnp.float32)
          + jnp.dot(xe_ref[...].astype(jnp.bfloat16), w0b_ref[...],
                    preferred_element_type=jnp.float32)
          + b0_ref[...])
    _mlp_tail(h0, w1_ref, b1_ref, w2_ref, b2_ref, w3_ref, b3_ref, o_ref)


def fc_kernel_noextra(x_ref,
                      w0a_ref, b0_ref,
                      w1_ref, b1_ref,
                      w2_ref, b2_ref,
                      w3_ref, b3_ref,
                      o_ref):
    h0 = jnp.dot(x_ref[...].astype(jnp.bfloat16), w0a_ref[...],
                 preferred_element_type=jnp.float32) + b0_ref[...]
    _mlp_tail(h0, w1_ref, b1_ref, w2_ref, b2_ref, w3_ref, b3_ref, o_ref)


def _const_spec(shape):
    """Whole-array block, constant across the batch grid (stays VMEM-resident)."""
    nd = len(shape)
    return pl.BlockSpec(shape, lambda i, _nd=nd: (0,) * _nd)


@functools.partial(jax.jit, static_argnames=("tb",))
def fc_forward(x, x_extra, params, *, tb=1024):
    """Forward pass of the FC module. x: (B, z_dim); x_extra: (B, extra_dim) or None."""
    B = x.shape[0]
    tb = max(256, _round_up(tb, 256))
    if B <= 256:
        TB = B          # single whole-array block: no tiling/divisibility constraints
    else:
        # TB a multiple of 256 (MXU/sublane friendly); cap so the grid has >= 2
        # steps when possible so v7x's two TensorCores both get work.
        TB = max(256, min(tb, _round_up(_cdiv(B, 2), 256)))
    G = _cdiv(B, TB)    # partial edge block allowed; no wrapper-side pad copy

    row_spec = lambda ncols: pl.BlockSpec((TB, ncols), lambda i: (i, 0))

    weight_args = (
        params["w0a"], params["b0"],
        params["w1"], params["b1"],
        params["w2"], params["b2"],
        params["w3"], params["b3"],
    )
    weight_specs = [_const_spec(a.shape) for a in weight_args]

    if x_extra is not None:
        kernel = fc_kernel_extra
        args = (x, x_extra, params["w0a"], params["w0b"]) + weight_args[1:]
        in_specs = ([row_spec(x.shape[1]), row_spec(x_extra.shape[1]),
                     _const_spec(params["w0a"].shape),
                     _const_spec(params["w0b"].shape)]
                    + weight_specs[1:])
    else:
        kernel = fc_kernel_noextra
        args = (x,) + weight_args
        in_specs = [row_spec(x.shape[1])] + weight_specs

    out = pl.pallas_call(
        kernel,
        out_shape=jax.ShapeDtypeStruct((G, TB), jnp.float32),   # lane-dense rows
        grid=(G,),
        in_specs=in_specs,
        out_specs=pl.BlockSpec((1, TB), lambda i: (i, 0)),
        compiler_params=pltpu.CompilerParams(
            dimension_semantics=("parallel",),
            vmem_limit_bytes=32 * 1024 * 1024),
    )(*args)
    # (G, TB) row-major flattening is exactly batch order; the trailing garbage
    # rows of the edge block are dropped by the [:B] slice.
    return out.reshape(G * TB, 1)[:B]


def _torch_linear_init(key, fan_in, fan_out):
    """PyTorch nn.Linear default init: U(-1/sqrt(fan_in), 1/sqrt(fan_in))."""
    kw, kb = jax.random.split(key)
    bound = 1.0 / jnp.sqrt(jnp.float32(fan_in))
    # weight stored as (in, out) == PyTorch weight.T
    w = jax.random.uniform(kw, (fan_in, fan_out), jnp.float32, -bound, bound)
    b = jax.random.uniform(kb, (1, fan_out), jnp.float32, -bound, bound)
    return w, b


def init_params(key, z_dim, extra_dim=0):
    d_in = z_dim + extra_dim
    k0, k1, k2, k3 = jax.random.split(key, 4)
    w0, b0 = _torch_linear_init(k0, d_in, 512)
    w1, b1 = _torch_linear_init(k1, 512, 256)
    w2, b2 = _torch_linear_init(k2, 256, 256)
    w3, b3 = _torch_linear_init(k3, 256, 1)
    params = dict(
        # weights in bf16 (halves weight HBM traffic); biases stay f32
        w0a=w0[:z_dim].astype(jnp.bfloat16),
        b0=b0,
        w1=w1.astype(jnp.bfloat16), b1=b1,
        w2=w2.astype(jnp.bfloat16), b2=b2,
        # final weight kept as a (1, 256) row (LHS of the transposed-RHS dot)
        w3=w3.T.astype(jnp.bfloat16), b3=b3,  # b3: (1, 1)
    )
    if extra_dim > 0:
        params["w0b"] = w0[z_dim:].astype(jnp.bfloat16)
    return params


def fc_reference(x, x_extra, params):
    """Pure-JAX reference at matching precision (bf16 weights/act, f32 accum)."""
    bf = jnp.bfloat16
    h = jnp.dot(x.astype(bf), params["w0a"], preferred_element_type=jnp.float32)
    if x_extra is not None:
        h = h + jnp.dot(x_extra.astype(bf), params["w0b"],
                        preferred_element_type=jnp.float32)
    h = jnp.maximum(h + params["b0"], 0.0).astype(bf)
    h = jnp.maximum(jnp.dot(h, params["w1"],
                            preferred_element_type=jnp.float32) + params["b1"], 0.0).astype(bf)
    h = jnp.maximum(jnp.dot(h, params["w2"],
                            preferred_element_type=jnp.float32) + params["b2"], 0.0).astype(bf)
    o = jnp.dot(h, params["w3"].T,
                preferred_element_type=jnp.float32) + params["b3"]
    return jnp.tanh(o)


if __name__ == "__main__":
    key = jax.random.PRNGKey(0)
    k_params, k_x, k_extra, k_x2, k_e2 = jax.random.split(key, 5)

    z_dim, extra_dim = 32, 16
    params = init_params(k_params, z_dim, extra_dim)

    # Small batch: single whole-array block.
    B = 8
    x = jax.random.normal(k_x, (B, z_dim), jnp.float32)
    x_extra = jax.random.normal(k_extra, (B, extra_dim), jnp.float32)
    out = jax.block_until_ready(fc_forward(x, x_extra, params))
    ref = fc_reference(x, x_extra, params)
    assert out.shape == (B, 1), out.shape
    err = float(jnp.max(jnp.abs(out - ref)))
    assert jnp.allclose(out, ref, atol=2e-3, rtol=2e-3), f"max abs err {err}"

    # Multi-block path with a partial edge block (no wrapper-side padding).
    B2 = 300
    x2 = jax.random.normal(k_x2, (B2, z_dim), jnp.float32)
    e2 = jax.random.normal(k_e2, (B2, extra_dim), jnp.float32)
    out2 = jax.block_until_ready(fc_forward(x2, e2, params))
    ref2 = fc_reference(x2, e2, params)
    assert out2.shape == (B2, 1), out2.shape
    err2 = float(jnp.max(jnp.abs(out2 - ref2)))
    assert jnp.allclose(out2, ref2, atol=2e-3, rtol=2e-3), f"max abs err {err2}"

    # x_extra = None path (extra_dim == 0 usage of the module).
    params_ne = init_params(k_params, z_dim, 0)
    out3 = jax.block_until_ready(fc_forward(x, None, params_ne))
    ref3 = fc_reference(x, None, params_ne)
    assert out3.shape == (B, 1), out3.shape
    err3 = float(jnp.max(jnp.abs(out3 - ref3)))
    assert jnp.allclose(out3, ref3, atol=2e-3, rtol=2e-3), f"max abs err {err3}"

    print("KERNEL_OK")
</pallas_src>

<mosaic_0001>
module attributes {stable_mosaic.version = 11 : i64} {
  func.func @fc_kernel_extra(%arg0: i32, %arg1: memref<8x32xf32, #tpu.memory_space<vmem>>, %arg2: memref<8x16xf32, #tpu.memory_space<vmem>>, %arg3: memref<32x512xbf16, #tpu.memory_space<vmem>>, %arg4: memref<16x512xbf16, #tpu.memory_space<vmem>>, %arg5: memref<1x512xf32, #tpu.memory_space<vmem>>, %arg6: memref<512x256xbf16, #tpu.memory_space<vmem>>, %arg7: memref<1x256xf32, #tpu.memory_space<vmem>>, %arg8: memref<256x256xbf16, #tpu.memory_space<vmem>>, %arg9: memref<1x256xf32, #tpu.memory_space<vmem>>, %arg10: memref<1x256xbf16, #tpu.memory_space<vmem>>, %arg11: memref<1x1xf32, #tpu.memory_space<vmem>>, %arg12: memref<1x8xf32, #tpu.memory_space<vmem>>) attributes {dimension_semantics = [#tpu.dimension_semantics<parallel>], iteration_bounds = array<i64: 1>, scalar_prefetch = 0 : i64, scratch_operands = 0 : i64, tpu.core_type = #tpu.core_type<tc>, window_params = [{transform_indices = @transform_0, window_bounds = array<i64: 8, 32>}, {transform_indices = @transform_1, window_bounds = array<i64: 8, 16>}, {pipeline_mode = #tpu.pipeline_mode<synchronous>, transform_indices = @transform_2, window_bounds = array<i64: 32, 512>}, {pipeline_mode = #tpu.pipeline_mode<synchronous>, transform_indices = @transform_3, window_bounds = array<i64: 16, 512>}, {pipeline_mode = #tpu.pipeline_mode<synchronous>, transform_indices = @transform_4, window_bounds = array<i64: 1, 512>}, {pipeline_mode = #tpu.pipeline_mode<synchronous>, transform_indices = @transform_5, window_bounds = array<i64: 512, 256>}, {pipeline_mode = #tpu.pipeline_mode<synchronous>, transform_indices = @transform_6, window_bounds = array<i64: 1, 256>}, {pipeline_mode = #tpu.pipeline_mode<synchronous>, transform_indices = @transform_7, window_bounds = array<i64: 256, 256>}, {pipeline_mode = #tpu.pipeline_mode<synchronous>, transform_indices = @transform_8, window_bounds = array<i64: 1, 256>}, {pipeline_mode = #tpu.pipeline_mode<synchronous>, transform_indices = @transform_9, window_bounds = array<i64: 1, 256>}, {pipeline_mode = #tpu.pipeline_mode<synchronous>, transform_indices = @transform_10, window_bounds = array<i64: 1, 1>}, {transform_indices = @transform_11, window_bounds = array<i64: 1, 8>}]} {
    %c0 = arith.constant 0 : index
    %c0_0 = arith.constant 0 : index
    %0 = vector.load %arg1[%c0, %c0_0] : memref<8x32xf32, #tpu.memory_space<vmem>>, vector<8x32xf32>
    %1 = arith.truncf %0 : vector<8x32xf32> to vector<8x32xbf16>
    %c0_1 = arith.constant 0 : index
    %c0_2 = arith.constant 0 : index
    %2 = vector.load %arg3[%c0_1, %c0_2] : memref<32x512xbf16, #tpu.memory_space<vmem>>, vector<32x512xbf16>
    %cst = arith.constant dense<0.000000e+00> : vector<8x512xf32>
    %3 = tpu.matmul %1, %2, %cst {dimension_numbers = #tpu.dot_dimension_numbers<[1], [0], [0], [1], [0, 0, 1, 1], [], []>} : vector<8x32xbf16>, vector<32x512xbf16>, vector<8x512xf32> -> vector<8x512xf32>
    %c0_3 = arith.constant 0 : index
    %c0_4 = arith.constant 0 : index
    %4 = vector.load %arg2[%c0_3, %c0_4] : memref<8x16xf32, #tpu.memory_space<vmem>>, vector<8x16xf32>
    %5 = arith.truncf %4 : vector<8x16xf32> to vector<8x16xbf16>
    %c0_5 = arith.constant 0 : index
    %c0_6 = arith.constant 0 : index
    %6 = vector.load %arg4[%c0_5, %c0_6] : memref<16x512xbf16, #tpu.memory_space<vmem>>, vector<16x512xbf16>
    %cst_7 = arith.constant dense<0.000000e+00> : vector<8x512xf32>
    %7 = tpu.matmul %5, %6, %cst_7 {dimension_numbers = #tpu.dot_dimension_numbers<[1], [0], [0], [1], [0, 0, 1, 1], [], []>} : vector<8x16xbf16>, vector<16x512xbf16>, vector<8x512xf32> -> vector<8x512xf32>
    %8 = arith.addf %3, %7 : vector<8x512xf32>
    %c0_8 = arith.constant 0 : index
    %c0_9 = arith.constant 0 : index
    %9 = vector.load %arg5[%c0_8, %c0_9] : memref<1x512xf32, #tpu.memory_space<vmem>>, vector<1x512xf32>
    %10 = vector.broadcast %9 : vector<1x512xf32> to vector<8x512xf32>
    %11 = arith.addf %8, %10 : vector<8x512xf32>
    %cst_10 = arith.constant 0.000000e+00 : f32
    %12 = vector.broadcast %cst_10 : f32 to vector<8x512xf32>
    %13 = arith.maximumf %11, %12 : vector<8x512xf32>
    %14 = arith.truncf %13 : vector<8x512xf32> to vector<8x512xbf16>
    %c0_11 = arith.constant 0 : index
    %c0_12 = arith.constant 0 : index
    %15 = vector.load %arg6[%c0_11, %c0_12] : memref<512x256xbf16, #tpu.memory_space<vmem>>, vector<512x256xbf16>
    %cst_13 = arith.constant dense<0.000000e+00> : vector<8x256xf32>
    %16 = tpu.matmul %14, %15, %cst_13 {dimension_numbers = #tpu.dot_dimension_numbers<[1], [0], [0], [1], [0, 0, 1, 1], [], []>} : vector<8x512xbf16>, vector<512x256xbf16>, vector<8x256xf32> -> vector<8x256xf32>
    %c0_14 = arith.constant 0 : index
    %c0_15 = arith.constant 0 : index
    %17 = vector.load %arg7[%c0_14, %c0_15] : memref<1x256xf32, #tpu.memory_space<vmem>>, vector<1x256xf32>
    %18 = vector.broadcast %17 : vector<1x256xf32> to vector<8x256xf32>
    %19 = arith.addf %16, %18 : vector<8x256xf32>
    %cst_16 = arith.constant 0.000000e+00 : f32
    %20 = vector.broadcast %cst_16 : f32 to vector<8x256xf32>
    %21 = arith.maximumf %19, %20 : vector<8x256xf32>
    %22 = arith.truncf %21 : vector<8x256xf32> to vector<8x256xbf16>
    %c0_17 = arith.constant 0 : index
    %c0_18 = arith.constant 0 : index
    %23 = vector.load %arg8[%c0_17, %c0_18] : memref<256x256xbf16, #tpu.memory_space<vmem>>, vector<256x256xbf16>
    %cst_19 = arith.constant dense<0.000000e+00> : vector<8x256xf32>
    %24 = tpu.matmul %22, %23, %cst_19 {dimension_numbers = #tpu.dot_dimension_numbers<[1], [0], [0], [1], [0, 0, 1, 1], [], []>} : vector<8x256xbf16>, vector<256x256xbf16>, vector<8x256xf32> -> vector<8x256xf32>
    %c0_20 = arith.constant 0 : index
    %c0_21 = arith.constant 0 : index
    %25 = vector.load %arg9[%c0_20, %c0_21] : memref<1x256xf32, #tpu.memory_space<vmem>>, vector<1x256xf32>
    %26 = vector.broadcast %25 : vector<1x256xf32> to vector<8x256xf32>
    %27 = arith.addf %24, %26 : vector<8x256xf32>
    %cst_22 = arith.constant 0.000000e+00 : f32
    %28 = vector.broadcast %cst_22 : f32 to vector<8x256xf32>
    %29 = arith.maximumf %27, %28 : vector<8x256xf32>
    %30 = arith.truncf %29 : vector<8x256xf32> to vector<8x256xbf16>
    %c0_23 = arith.constant 0 : index
    %c0_24 = arith.constant 0 : index
    %31 = vector.load %arg10[%c0_23, %c0_24] : memref<1x256xbf16, #tpu.memory_space<vmem>>, vector<1x256xbf16>
    %cst_25 = arith.constant dense<0.000000e+00> : vector<1x8xf32>
    %32 = tpu.matmul %31, %30, %cst_25 {dimension_numbers = #tpu.dot_dimension_numbers<[1], [1], [0], [0], [0, 0, 1, 0], [], []>} : vector<1x256xbf16>, vector<8x256xbf16>, vector<1x8xf32> -> vector<1x8xf32>
    %c0_26 = arith.constant 0 : index
    %c0_27 = arith.constant 0 : index
    %33 = vector.load %arg11[%c0_26, %c0_27] : memref<1x1xf32, #tpu.memory_space<vmem>>, vector<1x1xf32>
    %34 = vector.broadcast %33 : vector<1x1xf32> to vector<1x8xf32>
    %35 = arith.addf %32, %34 : vector<1x8xf32>
    %36 = math.tanh %35 : vector<1x8xf32>
    %c0_28 = arith.constant 0 : index
    %c0_29 = arith.constant 0 : index
    %37 = vector.load %arg12[%c0_28, %c0_29] : memref<1x8xf32, #tpu.memory_space<vmem>>, vector<1x8xf32>
    tpu.vector_store %arg12[%c0_28, %c0_29], %36 {strides = array<i32>} : memref<1x8xf32, #tpu.memory_space<vmem>>, vector<1x8xf32>,
    return
  }
  func.func @transform_0(%arg0: i32) -> (i32, i32) {
    %c0_i32 = arith.constant 0 : i32
    %c0_i32_0 = arith.constant 0 : i32
    return %arg0, %c0_i32 : i32, i32
  }
  func.func @transform_1(%arg0: i32) -> (i32, i32) {
    %c0_i32 = arith.constant 0 : i32
    %c0_i32_0 = arith.constant 0 : i32
    return %arg0, %c0_i32 : i32, i32
  }
  func.func @transform_2(%arg0: i32) -> (i32, i32) {
    %c0_i32 = arith.constant 0 : i32
    %c0_i32_0 = arith.constant 0 : i32
    %c0_i32_1 = arith.constant 0 : i32
    return %c0_i32, %c0_i32_0 : i32, i32
  }
  func.func @transform_3(%arg0: i32) -> (i32, i32) {
    %c0_i32 = arith.constant 0 : i32
    %c0_i32_0 = arith.constant 0 : i32
    %c0_i32_1 = arith.constant 0 : i32
    return %c0_i32, %c0_i32_0 : i32, i32
  }
  func.func @transform_4(%arg0: i32) -> (i32, i32) {
    %c0_i32 = arith.constant 0 : i32
    %c0_i32_0 = arith.constant 0 : i32
    %c0_i32_1 = arith.constant 0 : i32
    return %c0_i32, %c0_i32_0 : i32, i32
  }
  func.func @transform_5(%arg0: i32) -> (i32, i32) {
    %c0_i32 = arith.constant 0 : i32
    %c0_i32_0 = arith.constant 0 : i32
    %c0_i32_1 = arith.constant 0 : i32
    return %c0_i32, %c0_i32_0 : i32, i32
  }
  func.func @transform_6(%arg0: i32) -> (i32, i32) {
    %c0_i32 = arith.constant 0 : i32
    %c0_i32_0 = arith.constant 0 : i32
    %c0_i32_1 = arith.constant 0 : i32
    return %c0_i32, %c0_i32_0 : i32, i32
  }
  func.func @transform_7(%arg0: i32) -> (i32, i32) {
    %c0_i32 = arith.constant 0 : i32
    %c0_i32_0 = arith.constant 0 : i32
    %c0_i32_1 = arith.constant 0 : i32
    return %c0_i32, %c0_i32_0 : i32, i32
  }
  func.func @transform_8(%arg0: i32) -> (i32, i32) {
    %c0_i32 = arith.constant 0 : i32
    %c0_i32_0 = arith.constant 0 : i32
    %c0_i32_1 = arith.constant 0 : i32
    return %c0_i32, %c0_i32_0 : i32, i32
  }
  func.func @transform_9(%arg0: i32) -> (i32, i32) {
    %c0_i32 = arith.constant 0 : i32
    %c0_i32_0 = arith.constant 0 : i32
    %c0_i32_1 = arith.constant 0 : i32
    return %c0_i32, %c0_i32_0 : i32, i32
  }
  func.func @transform_10(%arg0: i32) -> (i32, i32) {
    %c0_i32 = arith.constant 0 : i32
    %c0_i32_0 = arith.constant 0 : i32
    %c0_i32_1 = arith.constant 0 : i32
    return %c0_i32, %c0_i32_0 : i32, i32
  }
  func.func @transform_11(%arg0: i32) -> (i32, i32) {
    %c0_i32 = arith.constant 0 : i32
    %c0_i32_0 = arith.constant 0 : i32
    return %arg0, %c0_i32 : i32, i32
  }
}

</mosaic_0001>

<bundles_post_ra>
// kernel: fc_forward.1
= control target key start
LH: loop header
LB: loop body
LE: loop exit
PB: predicated region body
PF: predicated region fallthrough
CT: control target
= control target key end

     0   :  { %s2053_s0 = inlined_call_operand.hbm [shape: f32[8,32], index: 0, kind: input, shape index: {}]   ;;  %s2054_s1 = inlined_call_operand.hbm [shape: f32[8,16], index: 1, kind: input, shape index: {}]   ;;  %s2055_s2 = inlined_call_operand.hbm [shape: bf16[32,512], index: 2, kind: input, shape index: {}]   ;;  %s2056_s3 = inlined_call_operand.hbm [shape: bf16[16,512], index: 3, kind: input, shape index: {}]   ;;  %s2057_s4 = inlined_call_operand.hbm [shape: f32[1,512], index: 4, kind: input, shape index: {}]   ;;  %s2058_s5 = inlined_call_operand.hbm [shape: bf16[512,256], index: 5, kind: input, shape index: {}]   ;;  %s2059_s6 = inlined_call_operand.vmem [shape: f32[1,256], index: 6, kind: input, shape index: {}]   ;;  %s2060_s7 = inlined_call_operand.hbm [shape: bf16[256,256], index: 7, kind: input, shape index: {}]   ;;  %s2061_s8 = inlined_call_operand.vmem [shape: f32[1,256], index: 8, kind: input, shape index: {}]   ;;  %s2062_s9 = inlined_call_operand.vmem [shape: bf16[1,256], index: 9, kind: input, shape index: {}]   ;;  %s2063_s10 = inlined_call_operand.<no memory space> [shape: f32[1,1], index: 10, kind: input, shape index: {}]   ;;  %s2064_s11 = inlined_call_operand.hbm [shape: f32[1,8], index: 11, kind: output, shape index: {}]  }
   0x1   :  { %v16_v0 = vstv %s2063_s10 }
   0x2   :  { %17 = vst [vmem:[#allocation2] sm:$0x1] %v16_v0 }
   0x3   :  { %18 = vsyncpa [#allocation4], 0 }
   0x4   :  { %19 = vsyncpa [#allocation7], 0 }
   0x5   :  { %20 = vsyncpa [#allocation10], 0 }
   0x6   :  { %21 = vsyncpa [#allocation13], 0  ;;  %s39_s21 = sshll.u32 %s2054_s1, 4  ;;  %s40_s21 = int_to_ptr.hbm [resolvable:$true] %s39_s21 }
   0x7   :  { %22 = vsyncpa [#allocation5], 0  ;;  %s1936_s22 = smov [#allocation6]   ;;  %s62_s26 = sshll.u32 %s2056_s3, 4  ;;  %s63_s26 = int_to_ptr.hbm [resolvable:$true] %s62_s26 }
   0x8   :  { %s41_s23 = sshll.u32 %s1936_s22, 4  ;;  %s1937_s10 = smov [#allocation9]   ;;  %s42_s23 = int_to_ptr.vmem [resolvable:$true] %s41_s23 }
   0x9   :  { %44 = dma.hbm_to_vmem [thread:$0]  %s40_s21, 128, %s42_s23, [#allocation7]  }
   0xa   :  { %s64_s27 = sshll.u32 %s1937_s10, 4  ;;  %s86_s30 = sshll.u32 %s2058_s5, 4  ;;  %s65_s27 = int_to_ptr.vmem [resolvable:$true] %s64_s27  ;;  %s87_s30 = int_to_ptr.hbm [resolvable:$true] %s86_s30 }
   0xb   :  { %s1938_s1 = smov 256   ;;  %s1939_s12 = smov 16  }
   0xc   :  { %70 = dma.hbm_to_vmem [thread:$0]  %s63_s26, 512, %s65_s27, [#allocation10], %s1938_s1, %s1938_s1, %s1939_s12  }
   0xd   :  { %s1940_s13 = smov [#allocation12]   ;;  %s28_s17 = sshll.u32 %s2053_s0, 4  ;;  %s29_s17 = int_to_ptr.hbm [resolvable:$true] %s28_s17 }
   0xe   :  { %s88_s14 = sshll.u32 %s1940_s13, 4  ;;  %s1941_s3 = smov 128   ;;  %s89_s14 = int_to_ptr.vmem [resolvable:$true] %s88_s14 }
   0xf   :  { %s1942_s18 = smov 8   ;;  %s1943_s19 = smov [#allocation3]  }
  0x10   :  { %94 = dma.hbm_to_vmem [thread:$0]  %s87_s30, 8192, %s89_s14, [#allocation13], %s1941_s3, %s1941_s3, %s1942_s18  }
  0x11   :  { %s30_s20 = sshll.u32 %s1943_s19, 4  ;;  %s49_s22 = sshll.u32 %s2055_s2, 4  ;;  %s31_s20 = int_to_ptr.vmem [resolvable:$true] %s30_s20  ;;  %s50_s22 = int_to_ptr.hbm [resolvable:$true] %s49_s22 }
  0x12   :  { %33 = dma.hbm_to_vmem [thread:$0]  %s29_s17, 128, %s31_s20, [#allocation4]  }
  0x13   :  { %s76_s25 = sshll.u32 %s2057_s4, 4  ;;  %s1944_s26 = smov [#allocation8]   ;;  %s77_s25 = int_to_ptr.hbm [resolvable:$true] %s76_s25 }
  0x14   :  { %s51_s10 = sshll.u32 %s1944_s26, 4  ;;  %s1945_s0 = smov [#allocation11]   ;;  %s52_s10 = int_to_ptr.vmem [resolvable:$true] %s51_s10 }
  0x15   :  { %57 = dma.hbm_to_vmem [thread:$0]  %s50_s22, 1024, %s52_s10, [#allocation7], %s1938_s1, %s1938_s1, %s1939_s12  }
  0x16   :  { %s78_s27 = sshll.u32 %s1945_s0, 4  ;;  %s101_s30 = sshll.u32 %s2060_s7, 4  ;;  %s79_s27 = int_to_ptr.vmem [resolvable:$true] %s78_s27  ;;  %s102_s30 = int_to_ptr.hbm [resolvable:$true] %s101_s30 }
  0x17   :  { %81 = dma.hbm_to_vmem [thread:$0]  %s77_s25, 64, %s79_s27, [#allocation10]  }
  0x18   :  { %s1946_s2 = smov [#allocation14]  }
  0x19   :  { %s103_s13 = sshll.u32 %s1946_s2, 4  ;;  %s104_s13 = int_to_ptr.vmem [resolvable:$true] %s103_s13 }
  0x1a   :  { %109 = dma.hbm_to_vmem [thread:$0]  %s102_s30, 4096, %s104_s13, [#allocation13], %s1941_s3, %s1941_s3, %s1942_s18  }
  0x1b   :  { %1926 = dma.done.wait [#allocation4], 128  }
  0x1c   :  { %1927 = vsyncadd [#allocation4], 4294967168 }
  0x1d   :  { %1928 = dma.done.wait [#allocation7], 1152  }
  0x1e   :  { %1929 = vsyncadd [#allocation7], 4294966144 }
  0x1f   :  { %1930 = dma.done.wait [#allocation10], 576  }
  0x20   :  { %1931 = vsyncadd [#allocation10], 4294966720 }
  0x21   :  { %1932 = dma.done.wait [#allocation13], 12288  }
  0x22   :  { %1933 = vsyncadd [#allocation13], 4294955008  ;;  %v1172_v1 = vld [vmem:[#allocation9] sm:$0xf]  ;;  %v1620_v2 = vld [vmem:[#allocation9 + $0xc] sm:$0xf0] }
  0x23   :  { %v1618_v3 = vld [vmem:[#allocation9 + $0x4] sm:$0xf]  ;;  %v1173_v4 = vor.u32 %v1620_v2, %v1172_v1  ;;  %v1174_v5 = vld [vmem:[#allocation9 + $0x10] sm:$0xf0]  ;;  %v1180_v6 = vld [vmem:[#allocation9 + $0x8] sm:$0xf] }
  0x24   :  { %v1621_v7 = vld [vmem:[#allocation9 + $0x14] sm:$0xf0]  ;;  %v1177_v8 = vor.u32 %v1618_v3, %v1174_v5  ;;  %v1619_v10 = vld [vmem:[#allocation9 + $0xc] sm:$0xf]  ;;  %v1182_v11 = vld [vmem:[#allocation9 + $0x18] sm:$0xf0] }
  0x25   :  { %v1181_v9 = vor.u32 %v1621_v7, %v1180_v6  ;;  %v155_v12 = vld [vmem:[#allocation6] sm:$0xff]  ;;  %vm181_vm0 = vcmask 130048   ;;  %192 = vmatpush.bf16.msra.mxu0 %v1173_v4  ;;  %v1185_v13 = vor.u32 %v1619_v10, %v1182_v11  ;;  %v1208_v15 = vld [vmem:[#allocation8 + $0x20] sm:$0xf]  ;;  %v1616_v16 = vld [vmem:[#allocation8 + $0x2c] sm:$0xf0] }
  0x26   :  { %v156_v14 = vpack.c.bf16 %v155_v12, %v155_v12  ;;  %v1614_v17 = vld [vmem:[#allocation8 + $0x24] sm:$0xf]  ;;  %205 = vmatpush.bf16.msra.mxu1 %v1177_v8  ;;  %v1209_v18 = vor.u32 %v1616_v16, %v1208_v15  ;;  %v1210_v19 = vld [vmem:[#allocation8 + $0x30] sm:$0xf0]  ;;  %v1216_v20 = vld [vmem:[#allocation8 + $0x28] sm:$0xf] }
  0x27   :  { %218 = vmatpush.bf16.msra.mxu2 %v1181_v9  ;;  %v1617_v21 = vld [vmem:[#allocation8 + $0x34] sm:$0xf0]  ;;  %231 = vmatpush.bf16.msra.mxu3 %v1185_v13  ;;  %v1213_v22 = vor.u32 %v1614_v17, %v1210_v19  ;;  %v1615_v24 = vld [vmem:[#allocation8 + $0x2c] sm:$0xf]  ;;  %v1218_v25 = vld [vmem:[#allocation8 + $0x38] sm:$0xf0] }
  0x28   :  { %v1217_v23 = vor.u32 %v1617_v21, %v1216_v20  ;;  %v1192_v26 = vld [vmem:[#allocation8] sm:$0xf]  ;;  %1186 = vmatmul.msk.bf16.vlgmr.msra.gmra.mxu0 %vm181_vm0, %v156_v14  ;;  %v1221_v27 = vor.u32 %v1615_v24, %v1218_v25  ;;  %v1612_v28 = vld [vmem:[#allocation8 + $0xc] sm:$0xf0]  ;;  %v1610_v29 = vld [vmem:[#allocation8 + $0x4] sm:$0xf] }
  0x29   :  { %v1194_v30 = vld [vmem:[#allocation8 + $0x10] sm:$0xf0]  ;;  %1187 = vmatmul.msk.bf16.vlgmr.msra.gmra.mxu1 %vm181_vm0, %v156_v14  ;;  %v1200_v31 = vld [vmem:[#allocation8 + $0x8] sm:$0xf]  ;;  %v1613_v32 = vld [vmem:[#allocation8 + $0x14] sm:$0xf0]  ;;  %287 = vmatpush.bf16.msrb.mxu0 %v1209_v18  ;;  %v1193_v34 = vor.u32 %v1612_v28, %v1192_v26 }
  0x2a   :  { %1188 = vmatmul.msk.bf16.vlgmr.msra.gmra.mxu2 %vm181_vm0, %v156_v14  ;;  %v1611_v33 = vld [vmem:[#allocation8 + $0xc] sm:$0xf]  ;;  %1189 = vmatmul.msk.bf16.vlgmr.msra.gmra.mxu3 %vm181_vm0, %v156_v14  ;;  %v1202_v35 = vld [vmem:[#allocation8 + $0x18] sm:$0xf0]  ;;  %v1284_v36 = vld [vmem:[#allocation12 + $0x70] sm:$0xf]  ;;  %v1197_v37 = vor.u32 %v1610_v29, %v1194_v30  ;;  %v1201_v38 = vor.u32 %v1613_v32, %v1200_v31 }
  0x2b   :  { %300 = vmatpush.bf16.msrb.mxu1 %v1213_v22  ;;  %313 = vmatpush.bf16.msrb.mxu2 %v1217_v23  ;;  %v1637_v39 = vld [vmem:[#allocation12 + $0x74] sm:$0xf0]  ;;  %v1348_v40 = vld [vmem:[#allocation12 + $0xf0] sm:$0xf]  ;;  %v1205_v42 = vor.u32 %v1611_v33, %v1202_v35  ;;  %v1276_v44 = vld [vmem:[#allocation12 + $0x60] sm:$0xf] }
  0x2c   :  { %v1653_v41 = vld [vmem:[#allocation12 + $0xf4] sm:$0xf0]  ;;  %326 = vmatpush.bf16.msrb.mxu3 %v1221_v27  ;;  %v1285_v43 = vor.u32 %v1637_v39, %v1284_v36  ;;  %v1635_v45 = vld [vmem:[#allocation12 + $0x64] sm:$0xf0]  ;;  %v1340_v47 = vld [vmem:[#allocation12 + $0xe0] sm:$0xf] }
  0x2d   :  { %v1349_v46 = vor.u32 %v1653_v41, %v1348_v40  ;;  %v1412_v48 = vld [vmem:[#allocation12 + $0x170] sm:$0xf]  ;;  %v1669_v49 = vld [vmem:[#allocation12 + $0x174] sm:$0xf0]  ;;  %288 = vmatpush.bf16.msrb.mxu0 %v1193_v34  ;;  %v1651_v50 = vld [vmem:[#allocation12 + $0xe4] sm:$0xf0]  ;;  %v1277_v55 = vor.u32 %v1635_v45, %v1276_v44 }
  0x2e   :  { %v1413_v51 = vor.u32 %v1669_v49, %v1412_v48  ;;  %v1476_v52 = vld [vmem:[#allocation12 + $0x1f0] sm:$0xf]  ;;  %v1685_v53 = vld [vmem:[#allocation12 + $0x1f4] sm:$0xf0]  ;;  %v1404_v56 = vld [vmem:[#allocation12 + $0x160] sm:$0xf]  ;;  %v1341_v60 = vor.u32 %v1651_v50, %v1340_v47 }
  0x2f   :  { %301 = vmatpush.bf16.msrb.mxu1 %v1197_v37  ;;  %314 = vmatpush.bf16.msrb.mxu2 %v1201_v38  ;;  %v1477_v54 = vor.u32 %v1685_v53, %v1476_v52  ;;  %v1667_v57 = vld [vmem:[#allocation12 + $0x164] sm:$0xf0]  ;;  %v1468_v58 = vld [vmem:[#allocation12 + $0x1e0] sm:$0xf]  ;;  %v145_v59 = vld [vmem:[#allocation3] sm:$0xff]  ;;  %vm277_vm1 = vcmask 261120  }
  0x30   :  { %327 = vmatpush.bf16.msrb.mxu3 %v1205_v42  ;;  %v1405_v61 = vor.u32 %v1667_v57, %v1404_v56  ;;  %v1683_v62 = vld [vmem:[#allocation12 + $0x1e4] sm:$0xf0]  ;;  %v1268_v0 = vld [vmem:[#allocation12 + $0x50] sm:$0xf]  ;;  %v1633_v1 = vld [vmem:[#allocation12 + $0x54] sm:$0xf0]  ;;  %v146_v3 = vpack.c.bf16 %v145_v59, %v145_v59 }
  0x31   :  { %745 = vmatpush.bf16.msra.mxu0 %v1285_v43  ;;  %v1469_v63 = vor.u32 %v1683_v62, %v1468_v58  ;;  %v1332_v2 = vld [vmem:[#allocation12 + $0xd0] sm:$0xf]  ;;  %v1649_v4 = vld [vmem:[#allocation12 + $0xd4] sm:$0xf0]  ;;  %v1269_v9 = vor.u32 %v1633_v1, %v1268_v0  ;;  %v1260_v11 = vld [vmem:[#allocation12 + $0x40] sm:$0xf] }
  0x32   :  { %v1396_v5 = vld [vmem:[#allocation12 + $0x150] sm:$0xf]  ;;  %v1665_v6 = vld [vmem:[#allocation12 + $0x154] sm:$0xf0]  ;;  %v1333_v10 = vor.u32 %v1649_v4, %v1332_v2  ;;  %v1631_v12 = vld [vmem:[#allocation12 + $0x44] sm:$0xf0] }
  0x33   :  { %758 = vmatpush.bf16.msra.mxu1 %v1349_v46  ;;  %771 = vmatpush.bf16.msra.mxu2 %v1413_v51  ;;  %v1460_v7 = vld [vmem:[#allocation12 + $0x1d0] sm:$0xf]  ;;  %v1681_v8 = vld [vmem:[#allocation12 + $0x1d4] sm:$0xf0]  ;;  %v1324_v13 = vld [vmem:[#allocation12 + $0xc0] sm:$0xf]  ;;  %v1397_v14 = vor.u32 %v1665_v6, %v1396_v5  ;;  %v1261_v21 = vor.u32 %v1631_v12, %v1260_v11 }
  0x34   :  { %784 = vmatpush.bf16.msra.mxu3 %v1477_v54  ;;  %v1647_v15 = vld [vmem:[#allocation12 + $0xc4] sm:$0xf0]  ;;  %v1461_v16 = vor.u32 %v1681_v8, %v1460_v7  ;;  %v1388_v17 = vld [vmem:[#allocation12 + $0x140] sm:$0xf]  ;;  %v1252_v23 = vld [vmem:[#allocation12 + $0x30] sm:$0xf] }
  0x35   :  { %746 = vmatpush.bf16.msra.mxu0 %v1277_v55  ;;  %v1663_v18 = vld [vmem:[#allocation12 + $0x144] sm:$0xf0]  ;;  %v1452_v19 = vld [vmem:[#allocation12 + $0x1c0] sm:$0xf]  ;;  %v1325_v22 = vor.u32 %v1647_v15, %v1324_v13  ;;  %v1629_v24 = vld [vmem:[#allocation12 + $0x34] sm:$0xf0] }
  0x36   :  { %v1679_v20 = vld [vmem:[#allocation12 + $0x1c4] sm:$0xf0]  ;;  %v1389_v25 = vor.u32 %v1663_v18, %v1388_v17  ;;  %v1316_v26 = vld [vmem:[#allocation12 + $0xb0] sm:$0xf]  ;;  %v1645_v27 = vld [vmem:[#allocation12 + $0xb4] sm:$0xf0]  ;;  %v1253_v29 = vor.u32 %v1629_v24, %v1252_v23 }
  0x37   :  { %759 = vmatpush.bf16.msra.mxu1 %v1341_v60  ;;  %772 = vmatpush.bf16.msra.mxu2 %v1405_v61  ;;  %v1453_v28 = vor.u32 %v1679_v20, %v1452_v19  ;;  %v1317_v30 = vor.u32 %v1645_v27, %v1316_v26  ;;  %v1244_v31 = vld [vmem:[#allocation12 + $0x20] sm:$0xf]  ;;  %v1627_v32 = vld [vmem:[#allocation12 + $0x24] sm:$0xf0]  ;;  %v1380_v36 = vld [vmem:[#allocation12 + $0x130] sm:$0xf] }
  0x38   :  { %785 = vmatpush.bf16.msra.mxu3 %v1469_v63  ;;  %1222 = vmatmul.msk.bf16.vlgmr.msrb.gmra.mxu0 %vm277_vm1, %v146_v3  ;;  %v1308_v33 = vld [vmem:[#allocation12 + $0xa0] sm:$0xf]  ;;  %v1245_v34 = vor.u32 %v1627_v32, %v1244_v31  ;;  %v1643_v35 = vld [vmem:[#allocation12 + $0xa4] sm:$0xf0]  ;;  %v1661_v37 = vld [vmem:[#allocation12 + $0x134] sm:$0xf0] }
  0x39   :  { %1223 = vmatmul.msk.bf16.vlgmr.msrb.gmra.mxu1 %vm277_vm1, %v146_v3  ;;  %747 = vmatpush.bf16.msra.mxu0 %v1269_v9  ;;  %v1309_v38 = vor.u32 %v1643_v35, %v1308_v33  ;;  %v1381_v39 = vor.u32 %v1661_v37, %v1380_v36  ;;  %v1444_v40 = vld [vmem:[#allocation12 + $0x1b0] sm:$0xf]  ;;  %v1677_v41 = vld [vmem:[#allocation12 + $0x1b4] sm:$0xf0]  ;;  %v1372_v49 = vld [vmem:[#allocation12 + $0x120] sm:$0xf] }
  0x3a   :  { %1224 = vmatmul.msk.bf16.vlgmr.msrb.gmra.mxu2 %vm277_vm1, %v146_v3  ;;  %1225 = vmatmul.msk.bf16.vlgmr.msrb.gmra.mxu3 %vm277_vm1, %v146_v3  ;;  %v1236_v42 = vld [vmem:[#allocation12 + $0x10] sm:$0xf]  ;;  %v1445_v43 = vor.u32 %v1677_v41, %v1444_v40  ;;  %v1625_v44 = vld [vmem:[#allocation12 + $0x14] sm:$0xf0]  ;;  %v1659_v50 = vld [vmem:[#allocation12 + $0x124] sm:$0xf0] }
  0x3b   :  { %760 = vmatpush.bf16.msra.mxu1 %v1333_v10  ;;  %773 = vmatpush.bf16.msra.mxu2 %v1397_v14  ;;  %v1300_v45 = vld [vmem:[#allocation12 + $0x90] sm:$0xf]  ;;  %v1641_v46 = vld [vmem:[#allocation12 + $0x94] sm:$0xf0]  ;;  %v1237_v47 = vor.u32 %v1625_v44, %v1236_v42  ;;  %v1436_v51 = vld [vmem:[#allocation12 + $0x1a0] sm:$0xf]  ;;  %v1373_v52 = vor.u32 %v1659_v50, %v1372_v49 }
  0x3c   :  { %786 = vmatpush.bf16.msra.mxu3 %v1461_v16  ;;  %v1301_v48 = vor.u32 %v1641_v46, %v1300_v45  ;;  %v1675_v53 = vld [vmem:[#allocation12 + $0x1a4] sm:$0xf0]  ;;  %v1228_v55 = vld [vmem:[#allocation12] sm:$0xf]  ;;  %v1636_v60 = vld [vmem:[#allocation12 + $0x74] sm:$0xf] }
  0x3d   :  { %748 = vmatpush.bf16.msra.mxu0 %v1261_v21  ;;  %v1437_v54 = vor.u32 %v1675_v53, %v1436_v51  ;;  %v1623_v56 = vld [vmem:[#allocation12 + $0x4] sm:$0xf0]  ;;  %v1292_v57 = vld [vmem:[#allocation12 + $0x80] sm:$0xf]  ;;  %v1286_v61 = vld [vmem:[#allocation12 + $0x78] sm:$0xf0] }
  0x3e   :  { %v1229_v58 = vor.u32 %v1623_v56, %v1228_v55  ;;  %v1639_v59 = vld [vmem:[#allocation12 + $0x84] sm:$0xf0]  ;;  %v1289_v63 = vor.u32 %v1636_v60, %v1286_v61  ;;  %v1652_v0 = vld [vmem:[#allocation12 + $0xf4] sm:$0xf]  ;;  %v1350_v1 = vld [vmem:[#allocation12 + $0xf8] sm:$0xf0] }
  0x3f   :  { %761 = vmatpush.bf16.msra.mxu1 %v1325_v22  ;;  %774 = vmatpush.bf16.msra.mxu2 %v1389_v25  ;;  %v1293_v62 = vor.u32 %v1639_v59, %v1292_v57  ;;  %v1364_v2 = vld [vmem:[#allocation12 + $0x110] sm:$0xf]  ;;  %v1353_v3 = vor.u32 %v1652_v0, %v1350_v1  ;;  %v1657_v4 = vld [vmem:[#allocation12 + $0x114] sm:$0xf0]  ;;  %v1634_v9 = vld [vmem:[#allocation12 + $0x64] sm:$0xf] }
  0x40   :  { %787 = vmatpush.bf16.msra.mxu3 %v1453_v28  ;;  %v1428_v5 = vld [vmem:[#allocation12 + $0x190] sm:$0xf]  ;;  %v1673_v6 = vld [vmem:[#allocation12 + $0x194] sm:$0xf0]  ;;  %v1365_v7 = vor.u32 %v1657_v4, %v1364_v2  ;;  %v1278_v10 = vld [vmem:[#allocation12 + $0x68] sm:$0xf0] }
  0x41   :  { %749 = vmatpush.bf16.msra.mxu0 %v1253_v29  ;;  %v1429_v8 = vor.u32 %v1673_v6, %v1428_v5  ;;  %v1650_v11 = vld [vmem:[#allocation12 + $0xe4] sm:$0xf]  ;;  %v1281_v12 = vor.u32 %v1634_v9, %v1278_v10  ;;  %v1342_v13 = vld [vmem:[#allocation12 + $0xe8] sm:$0xf0]  ;;  %v1356_v14 = vld [vmem:[#allocation12 + $0x100] sm:$0xf] }
  0x42   :  { %v1655_v15 = vld [vmem:[#allocation12 + $0x104] sm:$0xf0]  ;;  %v1345_v16 = vor.u32 %v1650_v11, %v1342_v13  ;;  %v1420_v18 = vld [vmem:[#allocation12 + $0x180] sm:$0xf]  ;;  %v1668_v20 = vld [vmem:[#allocation12 + $0x174] sm:$0xf] }
  0x43   :  { %762 = vmatpush.bf16.msra.mxu1 %v1317_v30  ;;  %775 = vmatpush.bf16.msra.mxu2 %v1381_v39  ;;  %v1357_v17 = vor.u32 %v1655_v15, %v1356_v14  ;;  %v1671_v19 = vld [vmem:[#allocation12 + $0x184] sm:$0xf0]  ;;  %v1414_v22 = vld [vmem:[#allocation12 + $0x178] sm:$0xf0]  ;;  %v1684_v23 = vld [vmem:[#allocation12 + $0x1f4] sm:$0xf] }
  0x44   :  { %788 = vmatpush.bf16.msra.mxu3 %v1445_v43  ;;  %v1421_v21 = vor.u32 %v1671_v19, %v1420_v18  ;;  %v1478_v24 = vld [vmem:[#allocation12 + $0x1f8] sm:$0xf0]  ;;  %v1417_v25 = vor.u32 %v1668_v20, %v1414_v22  ;;  %v1632_v27 = vld [vmem:[#allocation12 + $0x54] sm:$0xf]  ;;  %v1666_v33 = vld [vmem:[#allocation12 + $0x164] sm:$0xf] }
  0x45   :  { %750 = vmatpush.bf16.msra.mxu0 %v1245_v34  ;;  %v1481_v26 = vor.u32 %v1684_v23, %v1478_v24  ;;  %v1270_v28 = vld [vmem:[#allocation12 + $0x58] sm:$0xf0]  ;;  %v1648_v30 = vld [vmem:[#allocation12 + $0xd4] sm:$0xf]  ;;  %v1406_v34 = vld [vmem:[#allocation12 + $0x168] sm:$0xf0] }
  0x46   :  { %v1273_v29 = vor.u32 %v1632_v27, %v1270_v28  ;;  %v1334_v31 = vld [vmem:[#allocation12 + $0xd8] sm:$0xf0]  ;;  %v1409_v35 = vor.u32 %v1666_v33, %v1406_v34  ;;  %v1682_v36 = vld [vmem:[#allocation12 + $0x1e4] sm:$0xf]  ;;  %v1470_v37 = vld [vmem:[#allocation12 + $0x1e8] sm:$0xf0] }
  0x47   :  { %763 = vmatpush.bf16.msra.mxu1 %v1309_v38  ;;  %776 = vmatpush.bf16.msra.mxu2 %v1373_v52  ;;  %v1337_v32 = vor.u32 %v1648_v30, %v1334_v31  ;;  %v1473_v38 = vor.u32 %v1682_v36, %v1470_v37  ;;  %v1630_v39 = vld [vmem:[#allocation12 + $0x44] sm:$0xf]  ;;  %v1262_v40 = vld [vmem:[#allocation12 + $0x48] sm:$0xf0]  ;;  %v1664_v45 = vld [vmem:[#allocation12 + $0x154] sm:$0xf] }
  0x48   :  { %789 = vmatpush.bf16.msra.mxu3 %v1437_v54  ;;  %v1646_v41 = vld [vmem:[#allocation12 + $0xc4] sm:$0xf]  ;;  %v1265_v42 = vor.u32 %v1630_v39, %v1262_v40  ;;  %v1326_v43 = vld [vmem:[#allocation12 + $0xc8] sm:$0xf0]  ;;  %v1398_v46 = vld [vmem:[#allocation12 + $0x158] sm:$0xf0] }
  0x49   :  { %751 = vmatpush.bf16.msra.mxu0 %v1237_v47  ;;  %v1329_v44 = vor.u32 %v1646_v41, %v1326_v43  ;;  %v1680_v47 = vld [vmem:[#allocation12 + $0x1d4] sm:$0xf]  ;;  %v1462_v49 = vld [vmem:[#allocation12 + $0x1d8] sm:$0xf0]  ;;  %v1662_v57 = vld [vmem:[#allocation12 + $0x144] sm:$0xf] }
  0x4a   :  { %v1465_v50 = vor.u32 %v1680_v47, %v1462_v49  ;;  %v1628_v51 = vld [vmem:[#allocation12 + $0x34] sm:$0xf]  ;;  %v1254_v52 = vld [vmem:[#allocation12 + $0x38] sm:$0xf0]  ;;  %v1678_v59 = vld [vmem:[#allocation12 + $0x1c4] sm:$0xf] }
  0x4b   :  { %764 = vmatpush.bf16.msra.mxu1 %v1301_v48  ;;  %777 = vmatpush.bf16.msra.mxu2 %v1365_v7  ;;  %v1401_v48 = vor.u32 %v1664_v45, %v1398_v46  ;;  %v1257_v53 = vor.u32 %v1628_v51, %v1254_v52  ;;  %v1644_v54 = vld [vmem:[#allocation12 + $0xb4] sm:$0xf]  ;;  %v1318_v55 = vld [vmem:[#allocation12 + $0xb8] sm:$0xf0]  ;;  %v1454_v61 = vld [vmem:[#allocation12 + $0x1c8] sm:$0xf0] }
  0x4c   :  { %790 = vmatpush.bf16.msra.mxu3 %v1429_v8  ;;  %v1321_v56 = vor.u32 %v1644_v54, %v1318_v55  ;;  %v1246_v0 = vld [vmem:[#allocation12 + $0x28] sm:$0xf0]  ;;  %v1642_v1 = vld [vmem:[#allocation12 + $0xa4] sm:$0xf]  ;;  %v1660_v5 = vld [vmem:[#allocation12 + $0x134] sm:$0xf] }
  0x4d   :  { %752 = vmatpush.bf16.msra.mxu0 %v1229_v58  ;;  %v1390_v58 = vld [vmem:[#allocation12 + $0x148] sm:$0xf0]  ;;  %v1382_v6 = vld [vmem:[#allocation12 + $0x138] sm:$0xf0]  ;;  %v1676_v7 = vld [vmem:[#allocation12 + $0x1b4] sm:$0xf] }
  0x4e   :  { %v1393_v60 = vor.u32 %v1662_v57, %v1390_v58  ;;  %v1385_v9 = vor.u32 %v1660_v5, %v1382_v6  ;;  %v1446_v10 = vld [vmem:[#allocation12 + $0x1b8] sm:$0xf0]  ;;  %v1624_v13 = vld [vmem:[#allocation12 + $0x14] sm:$0xf]  ;;  %v1658_v18 = vld [vmem:[#allocation12 + $0x124] sm:$0xf] }
  0x4f   :  { %765 = vmatpush.bf16.msra.mxu1 %v1293_v62  ;;  %778 = vmatpush.bf16.msra.mxu2 %v1357_v17  ;;  %v1457_v62 = vor.u32 %v1678_v59, %v1454_v61  ;;  %v1238_v14 = vld [vmem:[#allocation12 + $0x18] sm:$0xf0]  ;;  %v1640_v15 = vld [vmem:[#allocation12 + $0x94] sm:$0xf]  ;;  %v1374_v19 = vld [vmem:[#allocation12 + $0x128] sm:$0xf0] }
  0x50   :  { %791 = vmatpush.bf16.msra.mxu3 %v1421_v21  ;;  %v1302_v17 = vld [vmem:[#allocation12 + $0x98] sm:$0xf0]  ;;  %v1377_v21 = vor.u32 %v1658_v18, %v1374_v19  ;;  %v1674_v22 = vld [vmem:[#allocation12 + $0x1a4] sm:$0xf]  ;;  %v1438_v23 = vld [vmem:[#allocation12 + $0x1a8] sm:$0xf0] }
  0x51   :  { %797 = vmatpush.bf16.msrb.mxu0 %v1289_v63  ;;  %v1626_v63 = vld [vmem:[#allocation12 + $0x24] sm:$0xf]  ;;  %v1305_v20 = vor.u32 %v1640_v15, %v1302_v17  ;;  %v1294_v28 = vld [vmem:[#allocation12 + $0x88] sm:$0xf0]  ;;  %v1656_v31 = vld [vmem:[#allocation12 + $0x114] sm:$0xf] }
  0x52   :  { %v1249_v2 = vor.u32 %v1626_v63, %v1246_v0  ;;  %v1622_v24 = vld [vmem:[#allocation12 + $0x4] sm:$0xf]  ;;  %v1672_v33 = vld [vmem:[#allocation12 + $0x194] sm:$0xf]  ;;  %v1430_v34 = vld [vmem:[#allocation12 + $0x198] sm:$0xf0] }
  0x53   :  { %810 = vmatpush.bf16.msrb.mxu1 %v1353_v3  ;;  %823 = vmatpush.bf16.msrb.mxu2 %v1417_v25  ;;  %v1310_v3 = vld [vmem:[#allocation12 + $0xa8] sm:$0xf0]  ;;  %v1441_v25 = vor.u32 %v1674_v22, %v1438_v23  ;;  %v1638_v27 = vld [vmem:[#allocation12 + $0x84] sm:$0xf]  ;;  %v1433_v37 = vor.u32 %v1672_v33, %v1430_v34  ;;  %v333_v46 = vld [vmem:[#allocation11] sm:$0xf] }
  0x54   :  { %836 = vmatpush.bf16.msrb.mxu3 %v1481_v26  ;;  %v1313_v4 = vor.u32 %v1642_v1, %v1310_v3  ;;  %v1230_v26 = vld [vmem:[#allocation12 + $0x8] sm:$0xf0]  ;;  %v1297_v30 = vor.u32 %v1638_v27, %v1294_v28  ;;  %v1654_v41 = vld [vmem:[#allocation12 + $0x104] sm:$0xf]  ;;  %v335_v49 = vperm.slane %v333_v46, 0  ;;  %v336_v52 = vperm.slane %v333_v46, 1 }
  0x55   :  { %798 = vmatpush.bf16.msrb.mxu0 %v1281_v12  ;;  %v1449_v12 = vor.u32 %v1676_v7, %v1446_v10  ;;  %v1670_v43 = vld [vmem:[#allocation12 + $0x184] sm:$0xf]  ;;  %v1422_v45 = vld [vmem:[#allocation12 + $0x188] sm:$0xf0]  ;;  %v1540_v57 = vld [vmem:[#allocation14 + $0x70] sm:$0xf] }
  0x56   :  { %v1425_v47 = vor.u32 %v1670_v43, %v1422_v45  ;;  %v1701_v58 = vld [vmem:[#allocation14 + $0x74] sm:$0xf0]  ;;  %v1532_v3 = vld [vmem:[#allocation14 + $0x60] sm:$0xf]  ;;  %v1698_v22 = vld [vmem:[#allocation14 + $0x64] sm:$0xf] }
  0x57   :  { %811 = vmatpush.bf16.msrb.mxu1 %v1345_v16  ;;  %824 = vmatpush.bf16.msrb.mxu2 %v1409_v35  ;;  %v1241_v16 = vor.u32 %v1624_v13, %v1238_v14  ;;  %v1541_v63 = vor.u32 %v1701_v58, %v1540_v57  ;;  %v1542_v13 = vld [vmem:[#allocation14 + $0x78] sm:$0xf0]  ;;  %v1697_v17 = vld [vmem:[#allocation14 + $0x54] sm:$0xf0]  ;;  %v1534_v23 = vld [vmem:[#allocation14 + $0x68] sm:$0xf0] }
  0x58   :  { %837 = vmatpush.bf16.msrb.mxu3 %v1473_v38  ;;  %v1537_v28 = vor.u32 %v1698_v22, %v1534_v23  ;;  %v1695_v33 = vld [vmem:[#allocation14 + $0x44] sm:$0xf0]  ;;  %v1694_v34 = vld [vmem:[#allocation14 + $0x44] sm:$0xf]  ;;  %v1692_v43 = vld [vmem:[#allocation14 + $0x34] sm:$0xf] }
  0x59   :  { %799 = vmatpush.bf16.msrb.mxu0 %v1273_v29  ;;  %v1233_v29 = vor.u32 %v1622_v24, %v1230_v26  ;;  %v1572_v22 = vld [vmem:[#allocation14 + $0xb0] sm:$0xf]  ;;  %v1709_v23 = vld [vmem:[#allocation14 + $0xb4] sm:$0xf0]  ;;  %s1157_s17 = sshll.u32 %s2064_s11, 4  ;;  %vm1148_vm2 = vcmask 57344   ;;  %s1158_s17 = int_to_ptr.hbm [resolvable:$true] %s1157_s17 }
  0x5b   :  { %812 = vmatpush.bf16.msrb.mxu1 %v1337_v32  ;;  %825 = vmatpush.bf16.msrb.mxu2 %v1401_v48  ;;  %v1366_v32 = vld [vmem:[#allocation12 + $0x118] sm:$0xf0] }
  0x5c   :  { %838 = vmatpush.bf16.msrb.mxu3 %v1465_v50  ;;  %v1369_v36 = vor.u32 %v1656_v31, %v1366_v32  ;;  %v1516_v32 = vld [vmem:[#allocation14 + $0x40] sm:$0xf] }
  0x5d   :  { %800 = vmatpush.bf16.msrb.mxu0 %v1265_v42  ;;  %v1358_v42 = vld [vmem:[#allocation12 + $0x108] sm:$0xf0] }
  0x5f   :  { %813 = vmatpush.bf16.msrb.mxu1 %v1329_v44  ;;  %826 = vmatpush.bf16.msrb.mxu2 %v1393_v60  ;;  %v1361_v44 = vor.u32 %v1654_v41, %v1358_v42  ;;  %v1717_v42 = vld [vmem:[#allocation14 + $0xf4] sm:$0xf0] }
  0x60   :  { %839 = vmatpush.bf16.msrb.mxu3 %v1457_v62  ;;  %v337_v62 = vperm.slane %v333_v46, 2 }
  0x61   :  { %801 = vmatpush.bf16.msrb.mxu0 %v1257_v53 }
  0x63   :  { %814 = vmatpush.bf16.msrb.mxu1 %v1321_v56  ;;  %827 = vmatpush.bf16.msrb.mxu2 %v1385_v9 }
  0x64   :  { %840 = vmatpush.bf16.msrb.mxu3 %v1449_v12  ;;  %v1700_v12 = vld [vmem:[#allocation14 + $0x74] sm:$0xf] }
  0x65   :  { %802 = vmatpush.bf16.msrb.mxu0 %v1249_v2  ;;  %v338_v2 = vperm.slane %v333_v46, 3 }
  0x67   :  { %815 = vmatpush.bf16.msrb.mxu1 %v1313_v4  ;;  %828 = vmatpush.bf16.msrb.mxu2 %v1377_v21  ;;  %v1699_v4 = vld [vmem:[#allocation14 + $0x64] sm:$0xf0] }
  0x68   :  { %841 = vmatpush.bf16.msrb.mxu3 %v1441_v25  ;;  %v1533_v14 = vor.u32 %v1699_v4, %v1532_v3  ;;  %v1688_v3 = vld [vmem:[#allocation14 + $0x14] sm:$0xf]  ;;  %v1494_v4 = vld [vmem:[#allocation14 + $0x18] sm:$0xf0] }
  0x69   :  { %803 = vmatpush.bf16.msrb.mxu0 %v1241_v16  ;;  %v1524_v16 = vld [vmem:[#allocation14 + $0x50] sm:$0xf] }
  0x6a   :  { %v1525_v24 = vor.u32 %v1697_v17, %v1524_v16  ;;  %v1486_v17 = vld [vmem:[#allocation14 + $0x8] sm:$0xf0] }
  0x6b   :  { %816 = vmatpush.bf16.msrb.mxu1 %v1305_v20  ;;  %829 = vmatpush.bf16.msrb.mxu2 %v1369_v36  ;;  %v1545_v20 = vor.u32 %v1700_v12, %v1542_v13  ;;  %v1518_v36 = vld [vmem:[#allocation14 + $0x48] sm:$0xf0]  ;;  %v1580_v13 = vld [vmem:[#allocation14 + $0xc0] sm:$0xf] }
  0x6c   :  { %842 = vmatpush.bf16.msrb.mxu3 %v1433_v37  ;;  %v1521_v37 = vor.u32 %v1694_v34, %v1518_v36  ;;  %v1556_v34 = vld [vmem:[#allocation14 + $0x90] sm:$0xf]  ;;  %v1704_v36 = vld [vmem:[#allocation14 + $0x94] sm:$0xf] }
  0x6d   :  { %804 = vmatpush.bf16.msrb.mxu0 %v1233_v29  ;;  %v1696_v29 = vld [vmem:[#allocation14 + $0x54] sm:$0xf] }
  0x6f   :  { %817 = vmatpush.bf16.msrb.mxu1 %v1297_v30  ;;  %830 = vmatpush.bf16.msrb.mxu2 %v1361_v44  ;;  %v1526_v30 = vld [vmem:[#allocation14 + $0x58] sm:$0xf0] }
  0x70   :  { %843 = vmatpush.bf16.msrb.mxu3 %v1425_v47  ;;  %v1529_v31 = vor.u32 %v1696_v29, %v1526_v30  ;;  %v1510_v44 = vld [vmem:[#allocation14 + $0x38] sm:$0xf0]  ;;  %v1716_v47 = vld [vmem:[#allocation14 + $0xf4] sm:$0xf]  ;;  %v1707_v29 = vld [vmem:[#allocation14 + $0xa4] sm:$0xf0] }
  0x71   :  { %v1513_v46 = vor.u32 %v1692_v43, %v1510_v44  ;;  %v1706_v30 = vld [vmem:[#allocation14 + $0xa4] sm:$0xf]  ;;  %v1548_v43 = vld [vmem:[#allocation14 + $0x80] sm:$0xf]  ;;  %v1703_v44 = vld [vmem:[#allocation14 + $0x84] sm:$0xf0] }
  0xa5   :  { %v194_v8 = vpop.f32.mrf.mxu0 }
  0xa6   :  { %v207_v11 = vpop.f32.mrf.mxu1 }
  0xad   :  { %v220_v35 = vpop.f32.mrf.mxu2  ;;  %v233_v38 = vpop.f32.mrf.mxu3 }
  0xae   :  { %v196_v39 = vpop.f32.mrf.mxu0  ;;  %v209_v40 = vpop.f32.mrf.mxu1 }
  0xaf   :  { %v1693_v39 = vld [vmem:[#allocation14 + $0x34] sm:$0xf0]  ;;  %v1604_v40 = vld [vmem:[#allocation14 + $0xf0] sm:$0xf] }
  0xb0   :  { %v1605_v45 = vor.u32 %v1717_v42, %v1604_v40  ;;  %v419_v40 = vld [vmem:[%s2059_s6] sm:$0x3] }
  0xb5   :  { %v222_v48 = vpop.f32.mrf.mxu2  ;;  %v235_v50 = vpop.f32.mrf.mxu3 }
  0xb6   :  { %v290_v51 = vpop.f32.mrf.mxu0  ;;  %v303_v54 = vpop.f32.mrf.mxu1  ;;  %v1606_v48 = vld [vmem:[#allocation14 + $0xf8] sm:$0xf0]  ;;  %v1500_v50 = vld [vmem:[#allocation14 + $0x20] sm:$0xf] }
  0xb7   :  { %v291_v53 = vadd.f32 %v290_v51, %v194_v8  ;;  %v304_v55 = vadd.f32 %v303_v54, %v207_v11  ;;  %v1691_v51 = vld [vmem:[#allocation14 + $0x24] sm:$0xf0] }
  0xb8   :  { %v1715_v54 = vld [vmem:[#allocation14 + $0xe4] sm:$0xf0] }
  0xb9   :  { %v343_v56 = vadd.f32 %v335_v49, %v291_v53  ;;  %v344_v59 = vadd.f32 %v336_v52, %v304_v55  ;;  %v1609_v49 = vor.u32 %v1716_v47, %v1606_v48  ;;  %v1596_v52 = vld [vmem:[#allocation14 + $0xe0] sm:$0xf]  ;;  %v1501_v53 = vor.u32 %v1691_v51, %v1500_v50  ;;  %v1690_v55 = vld [vmem:[#allocation14 + $0x24] sm:$0xf]  ;;  %v1550_v47 = vld [vmem:[#allocation14 + $0x88] sm:$0xf0] }
  0xba   :  { %v1597_v57 = vor.u32 %v1715_v54, %v1596_v52 }
  0xbb   :  { %v347_v60 = vmax.f32 %v343_v56, 0.0  ;;  %v348_v61 = vmax.f32 %v344_v59, 0.0  ;;  %v1502_v56 = vld [vmem:[#allocation14 + $0x28] sm:$0xf0]  ;;  %v1714_v59 = vld [vmem:[#allocation14 + $0xe4] sm:$0xf] }
  0xbc   :  { %v1505_v58 = vor.u32 %v1690_v55, %v1502_v56 }
  0xbd   :  { %v351_v0 = vpack.c.bf16 %v347_v60, %v347_v60  ;;  %v316_v1 = vpop.f32.mrf.mxu2  ;;  %v352_v5 = vpack.c.bf16 %v348_v61, %v348_v61  ;;  %v329_v7 = vpop.f32.mrf.mxu3  ;;  %v1598_v60 = vld [vmem:[#allocation14 + $0xe8] sm:$0xf0] }
  0xbe   :  { %v317_v6 = vadd.f32 %v316_v1, %v220_v35  ;;  %v292_v9 = vpop.f32.mrf.mxu0  ;;  %v330_v8 = vadd.f32 %v329_v7, %v233_v38  ;;  %v305_v10 = vpop.f32.mrf.mxu1  ;;  %v1517_v35 = vor.u32 %v1695_v33, %v1516_v32  ;;  %v1508_v38 = vld [vmem:[#allocation14 + $0x30] sm:$0xf]  ;;  %v1601_v61 = vor.u32 %v1714_v59, %v1598_v60  ;;  %v1712_v7 = vld [vmem:[#allocation14 + $0xd4] sm:$0xf]  ;;  %v1566_v32 = vld [vmem:[#allocation14 + $0xa8] sm:$0xf0] }
  0xbf   :  { %753 = vmatmul.bf16.vlgmr.msra.gmra.mxu0 %v351_v0  ;;  %766 = vmatmul.bf16.vlgmr.msra.gmra.mxu1 %v352_v5  ;;  %v1509_v41 = vor.u32 %v1693_v39, %v1508_v38  ;;  %v1590_v9 = vld [vmem:[#allocation14 + $0xd8] sm:$0xf0]  ;;  %v1484_v10 = vld [vmem:[#allocation14] sm:$0xf]  ;;  %v1569_v33 = vor.u32 %v1706_v30, %v1566_v32 }
  0xc0   :  { %v345_v11 = vadd.f32 %v337_v62, %v317_v6  ;;  %1051 = vmatpush.bf16.msra.mxu0 %v1541_v63  ;;  %v346_v15 = vadd.f32 %v338_v2, %v330_v8  ;;  %1064 = vmatpush.bf16.msra.mxu1 %v1605_v45  ;;  %v1492_v62 = vld [vmem:[#allocation14 + $0x10] sm:$0xf]  ;;  %v1689_v63 = vld [vmem:[#allocation14 + $0x14] sm:$0xf0]  ;;  %v1497_v6 = vor.u32 %v1688_v3, %v1494_v4  ;;  %v1558_v38 = vld [vmem:[#allocation14 + $0x98] sm:$0xf0] }
  0xc1   :  { %v1493_v1 = vor.u32 %v1689_v63, %v1492_v62  ;;  %v1713_v2 = vld [vmem:[#allocation14 + $0xd4] sm:$0xf0]  ;;  %v1593_v8 = vor.u32 %v1712_v7, %v1590_v9  ;;  %v1561_v39 = vor.u32 %v1704_v36, %v1558_v38  ;;  %v1702_v45 = vld [vmem:[#allocation14 + $0x84] sm:$0xf]  ;;  %v422_v62 = vperm.slane %v419_v40, 1 }
  0xc2   :  { %v349_v18 = vmax.f32 %v345_v11, 0.0  ;;  %v350_v19 = vmax.f32 %v346_v15, 0.0  ;;  %v1687_v11 = vld [vmem:[#allocation14 + $0x4] sm:$0xf0]  ;;  %v1686_v15 = vld [vmem:[#allocation14 + $0x4] sm:$0xf]  ;;  %v1553_v48 = vor.u32 %v1702_v45, %v1550_v47 }
  0xc3   :  { %v1485_v12 = vor.u32 %v1687_v11, %v1484_v10 }
  0xc4   :  { %v353_v21 = vpack.c.bf16 %v349_v18, %v349_v18  ;;  %1052 = vmatpush.bf16.msra.mxu0 %v1533_v14  ;;  %v354_v25 = vpack.c.bf16 %v350_v19, %v350_v19  ;;  %1065 = vmatpush.bf16.msra.mxu1 %v1597_v57  ;;  %v1711_v14 = vld [vmem:[#allocation14 + $0xc4] sm:$0xf0]  ;;  %v1710_v18 = vld [vmem:[#allocation14 + $0xc4] sm:$0xf]  ;;  %v1582_v19 = vld [vmem:[#allocation14 + $0xc8] sm:$0xf0] }
  0xc5   :  { %v318_v26 = vpop.f32.mrf.mxu2  ;;  %v331_v27 = vpop.f32.mrf.mxu3  ;;  %v1581_v16 = vor.u32 %v1711_v14, %v1580_v13  ;;  %v1107_v13 = vld [vmem:[%s2062_s9] sm:$0x3] }
  0xc6   :  { %779 = vmatmul.bf16.vlgmr.msra.gmra.mxu2 %v353_v21  ;;  %792 = vmatmul.bf16.vlgmr.msra.gmra.mxu3 %v354_v25  ;;  %v1574_v26 = vld [vmem:[#allocation14 + $0xb8] sm:$0xf0]  ;;  %1116 = vst [vmem:[#allocation1] ss:$9 sm:$0xff] %v1107_v13 }
  0xc7   :  { %1077 = vmatpush.bf16.msra.mxu2 %v1545_v20  ;;  %1090 = vmatpush.bf16.msra.mxu3 %v1609_v49  ;;  %v1489_v20 = vor.u32 %v1686_v15, %v1486_v17  ;;  %v421_v49 = vperm.slane %v419_v40, 0  ;;  %v1108_v15 = vld [vmem:[#allocation2] sm:$0x1] }
  0xc8   :  { %1053 = vmatpush.bf16.msra.mxu0 %v1525_v24  ;;  %v1708_v24 = vld [vmem:[#allocation14 + $0xb4] sm:$0xf] }
  0xc9   :  { %v1577_v27 = vor.u32 %v1708_v24, %v1574_v26 }
  0xcb   :  { %1078 = vmatpush.bf16.msra.mxu2 %v1537_v28  ;;  %1091 = vmatpush.bf16.msra.mxu3 %v1601_v61  ;;  %v1564_v28 = vld [vmem:[#allocation14 + $0xa0] sm:$0xf] }
  0xcc   :  { %1054 = vmatpush.bf16.msra.mxu0 %v1517_v35  ;;  %v1705_v35 = vld [vmem:[#allocation14 + $0x94] sm:$0xf0] }
  0xcd   :  { %v1118_v36 = vld [vmem:[#allocation1 + $0x9] sm:$0xff] }
  0xcf   :  { %805 = vmatmul.bf16.vlgmr.msrb.gmra.mxu0 %v351_v0  ;;  %1079 = vmatpush.bf16.msra.mxu2 %v1529_v31  ;;  %v1588_v0 = vld [vmem:[#allocation14 + $0xd0] sm:$0xf]  ;;  %v1565_v31 = vor.u32 %v1707_v29, %v1564_v28 }
  0xd0   :  { %818 = vmatmul.bf16.vlgmr.msrb.gmra.mxu1 %v352_v5  ;;  %1055 = vmatpush.bf16.msra.mxu0 %v1509_v41  ;;  %v1589_v5 = vor.u32 %v1713_v2, %v1588_v0 }
  0xd1   :  { %1092 = vmatpush.bf16.msra.mxu3 %v1593_v8 }
  0xd2   :  { %1066 = vmatpush.bf16.msra.mxu1 %v1589_v5 }
  0xd3   :  { %1080 = vmatpush.bf16.msra.mxu2 %v1521_v37  ;;  %v1557_v37 = vor.u32 %v1705_v35, %v1556_v34  ;;  %v1117_v34 = vld [vmem:[#allocation1] sm:$0xff] }
  0xd4   :  { %1056 = vmatpush.bf16.msra.mxu0 %v1501_v53 }
  0xd6   :  { %831 = vmatmul.bf16.vlgmr.msrb.gmra.mxu2 %v353_v21  ;;  %844 = vmatmul.bf16.vlgmr.msrb.gmra.mxu3 %v354_v25  ;;  %v1585_v21 = vor.u32 %v1710_v18, %v1582_v19  ;;  %v1573_v25 = vor.u32 %v1709_v23, %v1572_v22  ;;  %v885_v18 = vld [vmem:[%s2061_s8] sm:$0x3]  ;;  %s1948_s8 = smov [#allocation15]  }
  0xd7   :  { %1081 = vmatpush.bf16.msra.mxu2 %v1513_v46  ;;  %1067 = vmatpush.bf16.msra.mxu1 %v1581_v16  ;;  %v1549_v46 = vor.u32 %v1703_v44, %v1548_v43  ;;  %v1947_v16 = vmov 0   ;;  %v888_v24 = vperm.slane %v885_v18, 1  ;;  %s1155_s9 = sshll.u32 %s1948_s8, 4  ;;  %s1156_s9 = int_to_ptr.vmem [resolvable:$true] %s1155_s9 }
  0xd8   :  { %1057 = vmatpush.bf16.msra.mxu0 %v1493_v1  ;;  %1093 = vmatpush.bf16.msra.mxu3 %v1585_v21 }
  0xd9   :  { %1731 = vset.pattern.permute.xlu0 %v1947_v16 }
  0xda   :  { %1111 = vperm.xlu0 %1731, %v1108_v15  }
  0xdb   :  { %1082 = vmatpush.bf16.msra.mxu2 %v1505_v58  ;;  %1068 = vmatpush.bf16.msra.mxu1 %v1573_v25 }
  0xdc   :  { %1058 = vmatpush.bf16.msra.mxu0 %v1485_v12  ;;  %1094 = vmatpush.bf16.msra.mxu3 %v1577_v27 }
  0xdf   :  { %1083 = vmatpush.bf16.msra.mxu2 %v1497_v6  ;;  %1069 = vmatpush.bf16.msra.mxu1 %v1565_v31 }
  0xe0   :  { %1095 = vmatpush.bf16.msra.mxu3 %v1569_v33 }
  0xe3   :  { %1084 = vmatpush.bf16.msra.mxu2 %v1489_v20  ;;  %1070 = vmatpush.bf16.msra.mxu1 %v1557_v37  ;;  %v887_v20 = vperm.slane %v885_v18, 0 }
  0xe4   :  { %1096 = vmatpush.bf16.msra.mxu3 %v1561_v39 }
  0xe7   :  { %1071 = vmatpush.bf16.msra.mxu1 %v1549_v46 }
  0xe8   :  { %1097 = vmatpush.bf16.msra.mxu3 %v1553_v48 }
 0x13c   :  { %v754_v41 = vpop.f32.mrf.mxu0  ;;  %v767_v42 = vpop.f32.mrf.mxu1 }
 0x13d   :  { %v755_v50 = vadd.f32 %v754_v41, %v421_v49 }
 0x13f   :  { %v768_v53 = vadd.f32 %v767_v42, %v755_v50 }
 0x144   :  { %v756_v51 = vpop.f32.mrf.mxu0  ;;  %v769_v52 = vpop.f32.mrf.mxu1 }
 0x149   :  { %v780_v54 = vpop.f32.mrf.mxu2  ;;  %v793_v56 = vpop.f32.mrf.mxu3 }
 0x14a   :  { %v781_v55 = vadd.f32 %v780_v54, %v768_v53 }
 0x14c   :  { %v794_v57 = vadd.f32 %v793_v56, %v781_v55  ;;  %v806_v58 = vpop.f32.mrf.mxu0  ;;  %v1112_v37 = vpop.permute.xlu0 %1111 }
 0x14d   :  { %v819_v59 = vpop.f32.mrf.mxu1  ;;  %v807_v1 = vadd.f32 %v806_v58, %v422_v62  ;;  %v1114_v38 = vperm.slane %v1112_v37, 0 }
 0x14e   :  { %v849_v60 = vmax.f32 %v794_v57, 0.0 }
 0x14f   :  { %v820_v4 = vadd.f32 %v819_v59, %v807_v1 }
 0x150   :  { %v851_v61 = vpack.c.bf16 %v849_v60, %v849_v60 }
 0x151   :  { %v782_v63 = vpop.f32.mrf.mxu2  ;;  %v795_v0 = vpop.f32.mrf.mxu3 }
 0x152   :  { %1059 = vmatmul.bf16.vlgmr.msra.gmra.mxu0 %v851_v61  ;;  %1085 = vmatmul.bf16.vlgmr.msra.gmra.mxu2 %v851_v61 }
 0x154   :  { %v808_v2 = vpop.f32.mrf.mxu0 }
 0x155   :  { %v821_v3 = vpop.f32.mrf.mxu1 }
 0x159   :  { %v832_v5 = vpop.f32.mrf.mxu2  ;;  %v845_v7 = vpop.f32.mrf.mxu3 }
 0x15a   :  { %v833_v6 = vadd.f32 %v832_v5, %v820_v4 }
 0x15c   :  { %v846_v9 = vadd.f32 %v845_v7, %v833_v6 }
 0x15e   :  { %v850_v8 = vmax.f32 %v846_v9, 0.0 }
 0x160   :  { %v852_v10 = vpack.c.bf16 %v850_v8, %v850_v8 }
 0x161   :  { %v834_v11 = vpop.f32.mrf.mxu2  ;;  %v847_v12 = vpop.f32.mrf.mxu3 }
 0x162   :  { %1072 = vmatmul.bf16.vlgmr.msra.gmra.mxu1 %v852_v10  ;;  %1098 = vmatmul.bf16.vlgmr.msra.gmra.mxu3 %v852_v10 }
 0x1cf   :  { %v1060_v14 = vpop.f32.mrf.mxu0 }
 0x1d0   :  { %v1061_v22 = vadd.f32 %v1060_v14, %v887_v20 }
 0x1d5   :  { %v1086_v17 = vpop.f32.mrf.mxu2 }
 0x1d6   :  { %v1087_v27 = vadd.f32 %v1086_v17, %v888_v24 }
 0x1d7   :  { %v1062_v19 = vpop.f32.mrf.mxu0 }
 0x1dd   :  { %v1088_v21 = vpop.f32.mrf.mxu2 }
 0x1df   :  { %v1073_v23 = vpop.f32.mrf.mxu1 }
 0x1e0   :  { %v1074_v25 = vadd.f32 %v1073_v23, %v1061_v22 }
 0x1e2   :  { %v1103_v26 = vmax.f32 %v1074_v25, 0.0 }
 0x1e4   :  { %v1105_v28 = vpack.c.bf16 %v1103_v26, %v1103_v26 }
 0x1e5   :  { %v1099_v29 = vpop.f32.mrf.mxu3 }
 0x1e6   :  { %v1100_v30 = vadd.f32 %v1099_v29, %v1087_v27  ;;  %1128 = vmatpush.bf16.xpose.msrb.mxu0 %v1105_v28 }
 0x1e7   :  { %v1075_v31 = vpop.f32.mrf.mxu1 }
 0x1e8   :  { %v1104_v32 = vmax.f32 %v1100_v30, 0.0 }
 0x1ea   :  { %v1106_v33 = vpack.c.bf16 %v1104_v32, %v1104_v32 }
 0x1ec   :  { %1141 = vmatpush.bf16.xpose.msrb.mxu1 %v1106_v33 }
 0x1ed   :  { %v1101_v35 = vpop.f32.mrf.mxu3  ;;  %1129 = vmatmul.bf16.vlgmr.msrb.gmra.mxu0 %v1117_v34 }
 0x1f3   :  { %1142 = vmatmul.bf16.vlgmr.msrb.gmra.mxu1 %v1118_v36 }
 0x26a   :  { %v1130_v39 = vpop.f32.mrf.mxu0 }
 0x26b   :  { %v1131_v40 = vadd.f32 %v1130_v39, %v1114_v38 }
 0x270   :  { %v1143_v41 = vpop.f32.mrf.mxu1 }
 0x271   :  { %v1144_v42 = vadd.f32 %v1143_v41, %v1131_v40 }
 0x272   :  { %v1132_v43 = vpop.f32.mrf.mxu0 }
 0x273   :  { %1732 = vtanh.f32 %v1144_v42 }
 0x278   :  { %v1145_v44 = vpop.f32.mrf.mxu1 }
 0x279   :  { %v1733_v45 = vpop.eup %1732 }
 0x27a   :  { %1149 = vst.msk [vmem:[#allocation15] sm:$0x1] %vm1148_vm2, %v1733_v45 }
 0x27b   :  { %1160 = dma.vmem_to_hbm [thread:$0]  %s1156_s9, 16, %s1158_s17, [#allocation5]  }
 0x27c   :  { %1934 = dma.done.wait [#allocation5], 16  }
 0x27d   :  { %1935 = vsyncadd [#allocation5], 4294967280 }
 0x27e   :  { %1165 = vsyncpa [#allocation4], 1 }
 0x27f   :  { %1166 = vsyncpa [#allocation7], 1 }
 0x280   :  { %1167 = vsyncpa [#allocation10], 1 }
 0x281   :  { %1168 = vsyncpa [#allocation13], 1 }
 0x282   :  { %1169 = vsyncpa [#allocation5], 1 }

</bundles_post_ra>
